<compile_context>
chip_gen: v5e
topology: v5e:2x2
jax: 0.10.0
libtpu: 0.0.40
codegen_flags: <defaults>
</compile_context>

<pallas_src>
import functools

import jax
import jax.numpy as jnp
from jax import lax
from jax.experimental import pallas as pl
from jax.experimental.pallas import tpu as pltpu

TM_MAX = 1024                        # row-tile cap for the im2col GEMM path
VMEM_LIMIT = 40 * 1024 * 1024        # explicit scoped-VMEM limit (safe on v5e/v6e/v7x)


def _round_up(x, m):
    return (x + m - 1) // m * m


def _apply_act(out, activation):
    if activation == "relu":
        return jnp.maximum(out, 0.0)
    if activation == "tanh":
        return jnp.tanh(out)
    return out


# --------------------------- fused GEMM kernel -------------------------------
def _matmul_kernel(a_ref, b_ref, bias_ref, o_ref, *, activation):
    out = jnp.dot(a_ref[...], b_ref[...], preferred_element_type=jnp.float32)
    out = out + bias_ref[...]
    out = _apply_act(out, activation)
    o_ref[...] = out.astype(o_ref.dtype)


def _pick_tm(m):
    m16 = _round_up(m, 16)
    if m16 >= 256:
        # split M into >= 2 row blocks so both v7x TensorCores get work
        return min(TM_MAX, _round_up((m16 + 1) // 2, 16))
    return m16


def pallas_matmul(a, b, bias, activation="none", out_dtype=jnp.bfloat16):
    """out = act(a @ b + bias).  a:(M,K) (any float), b:(K,Np) bf16, Np%128==0."""
    M, K = a.shape
    Kb, Np = b.shape
    assert K == Kb, (K, Kb)
    a = a.astype(jnp.bfloat16)
    tm = _pick_tm(M)
    Mp = _round_up(M, tm)
    if Mp != M:
        a = jnp.pad(a, ((0, Mp - M), (0, 0)))
    out = pl.pallas_call(
        functools.partial(_matmul_kernel, activation=activation),
        out_shape=jax.ShapeDtypeStruct((Mp, Np), out_dtype),
        grid_spec=pltpu.PrefetchScalarGridSpec(
            num_scalar_prefetch=0,
            grid=(Mp // tm,),
            in_specs=[
                pl.BlockSpec((tm, K), lambda i: (i, 0)),    # K unpadded (full dim)
                pl.BlockSpec((K, Np), lambda i: (0, 0)),    # weight: VMEM resident
                pl.BlockSpec((1, Np), lambda i: (0, 0)),
            ],
            out_specs=pl.BlockSpec((tm, Np), lambda i: (i, 0)),
        ),
        compiler_params=pltpu.CompilerParams(
            dimension_semantics=("parallel",),
            vmem_limit_bytes=VMEM_LIMIT),
    )(a, b.astype(jnp.bfloat16), bias.astype(jnp.float32))
    return out[:M] if Mp != M else out


def ref_matmul(a, b, bias, activation="none", out_dtype=jnp.bfloat16):
    """Pure-JAX reference with the same bf16-in / f32-acc numerics."""
    out = jnp.dot(a.astype(jnp.bfloat16), b.astype(jnp.bfloat16),
                  preferred_element_type=jnp.float32) + bias.astype(jnp.float32)
    return _apply_act(out, activation).astype(out_dtype)


# ---------------- fused 3x3 res-block conv (no HBM im2col) -------------------
def _conv3x3_kernel(x_ref, w_ref, b_ref, *rest, tr, W, Wp, activation,
                    has_residual):
    if has_residual:
        res_ref, o_ref = rest
    else:
        (o_ref,) = rest
    cout = o_ref.shape[-1]
    m = tr * Wp
    base = pl.multiple_of(pl.program_id(1) * m, m)
    acc = jnp.zeros((m, cout), jnp.float32)
    for t in range(9):                      # static loop over the 9 taps
        dy, dx = divmod(t, 3)
        lhs = x_ref[0, pl.ds(base + dy * Wp + dx, m), :]   # shifted (m, C) slab
        acc = acc + jnp.dot(lhs, w_ref[t], preferred_element_type=jnp.float32)
    out = acc.reshape(tr, Wp, cout)[:, :W, :] + b_ref[...]
    if has_residual:
        out = out + res_ref[0].astype(jnp.float32)
    out = _apply_act(out, activation)
    o_ref[0] = out.astype(o_ref.dtype)


def _pick_tr(H, Wp):
    # prefer several row blocks (megacore) once each block's GEMM M >= 2048 rows
    for nblk in (8, 4, 2):
        if H % nblk == 0 and (H // nblk) * Wp >= 2048:
            return H // nblk
    return H


def _res_conv3x3_fused(x, layer, residual, activation):
    nb, H, W, C = x.shape
    cout = layer["n_out"]
    Wp = _round_up(W + 2, 8)
    # One reflect pad gives the 1-pixel halo plus junk rows/cols (bottom 1,
    # right Wp-W-2) so the full-width shifted tap slices always stay in bounds.
    xp = jnp.pad(x.astype(jnp.bfloat16),
                 ((0, 0), (1, 2), (1, Wp - W - 1), (0, 0)), mode="reflect")
    L = (H + 3) * Wp
    xflat = xp.reshape(nb, L, C)
    tr = _pick_tr(H, Wp)

    args = [xflat, layer["w"], layer["b"]]
    in_specs = [
        pl.BlockSpec((1, L, C), lambda b, r: (b, 0, 0)),       # image VMEM-resident
        pl.BlockSpec((9, C, cout), lambda b, r: (0, 0, 0)),    # per-tap weights
        pl.BlockSpec((1, cout), lambda b, r: (0, 0)),
    ]
    has_res = residual is not None
    if has_res:
        args.append(residual.astype(jnp.bfloat16))
        in_specs.append(pl.BlockSpec((1, tr, W, cout), lambda b, r: (b, r, 0, 0)))

    return pl.pallas_call(
        functools.partial(_conv3x3_kernel, tr=tr, W=W, Wp=Wp,
                          activation=activation, has_residual=has_res),
        out_shape=jax.ShapeDtypeStruct((nb, H, W, cout), jnp.bfloat16),
        grid_spec=pltpu.PrefetchScalarGridSpec(
            num_scalar_prefetch=0,
            grid=(nb, H // tr),
            in_specs=in_specs,
            out_specs=pl.BlockSpec((1, tr, W, cout), lambda b, r: (b, r, 0, 0)),
        ),
        compiler_params=pltpu.CompilerParams(
            dimension_semantics=("parallel", "parallel"),
            vmem_limit_bytes=VMEM_LIMIT),
    )(*args)


# ------------------------- conv lowering (JAX glue) --------------------------
def _im2col(x, kh, kw, stride):
    nb, h, w, c = x.shape
    ho = (h - kh) // stride + 1
    wo = (w - kw) // stride + 1
    cols = []
    for i in range(kh):
        for j in range(kw):
            cols.append(x[:, i:i + stride * ho:stride, j:j + stride * wo:stride, :])
    p = jnp.stack(cols, axis=3)                       # (nb, ho, wo, kh*kw, c)
    return p.reshape(nb * ho * wo, kh * kw * c), (nb, ho, wo)


def res_conv3x3(x, layer, residual=None, activation="relu", use_pallas=True):
    """3x3 stride-1 conv, reflection pad 1, fused bias / residual / activation."""
    nb, H, W, C = x.shape
    cout = layer["n_out"]
    Wp = _round_up(W + 2, 8)
    fits = (H >= 3 and Wp - W - 1 <= W - 1
            and (H + 3) * Wp * C * 2 * 2 <= 16 * 1024 * 1024)
    if use_pallas and fits:
        return _res_conv3x3_fused(x, layer, residual, activation)
    # Reference / fallback: reflection pad + im2col GEMM.
    # TODO(synk): row-block the halo DMA instead of falling back when the whole
    # padded image no longer fits in VMEM (very large resolutions).
    xp = jnp.pad(x, ((0, 0), (1, 1), (1, 1), (0, 0)), mode="reflect")
    patches, _ = _im2col(xp.astype(jnp.bfloat16), 3, 3, 1)
    mm = pallas_matmul if use_pallas else ref_matmul
    out = mm(patches, layer["w"].reshape(9 * C, cout), layer["b"],
             activation="none", out_dtype=jnp.float32)
    out = out[:, :cout].reshape(nb, H, W, cout)
    if residual is not None:
        out = out + residual.astype(jnp.float32)
    return _apply_act(out, activation).astype(jnp.bfloat16)


def conv2d_gemm(x, layer, *, stride=1, pad=0, pad_mode="constant",
                activation="none", matmul_fn=pallas_matmul):
    if pad > 0:
        x = jnp.pad(x, ((0, 0), (pad, pad), (pad, pad), (0, 0)), mode=pad_mode)
    patches, (nb, ho, wo) = _im2col(x.astype(jnp.bfloat16), layer["kh"],
                                    layer["kw"], stride)
    out = matmul_fn(patches, layer["w"], layer["b"], activation=activation)
    n_out = layer["n_out"]
    return out[:, :n_out].reshape(nb, ho, wo, n_out)


def conv_transpose_subpixel(x, layer, *, activation="relu",
                            matmul_fn=pallas_matmul):
    """ConvTranspose2d(k=3, s=2, p=1, op=1) as a 2x2 sub-pixel GEMM + depth-to-space."""
    nb, H, W, C = x.shape
    cout = layer["cout"]
    xp = jnp.pad(x, ((0, 0), (0, 1), (0, 1), (0, 0)))        # bottom/right zero halo
    patches, _ = _im2col(xp.astype(jnp.bfloat16), 2, 2, 1)   # (nb*H*W, 4*C)
    out = matmul_fn(patches, layer["w"], layer["b"], activation=activation)
    out = out[:, :4 * cout].reshape(nb, H, W, 2, 2, cout)
    # TODO(synk): the depth-to-space rearrangement stays an XLA transpose; it
    # could be folded into the kernel's out_spec index_map.
    return out.transpose(0, 1, 3, 2, 4, 5).reshape(nb, 2 * H, 2 * W, cout)


# ------------------------------- parameters ----------------------------------
def _conv_init(key, o, c, k):
    k1, k2 = jax.random.split(key)
    bound = 1.0 / (c * k * k) ** 0.5
    w = jax.random.uniform(k1, (o, c, k, k), jnp.float32, -bound, bound)
    b = jax.random.uniform(k2, (o,), jnp.float32, -bound, bound)
    return w, b


def _convt_init(key, cin, cout, k):
    k1, k2 = jax.random.split(key)
    bound = 1.0 / (cin * k * k) ** 0.5
    w = jax.random.uniform(k1, (cin, cout, k, k), jnp.float32, -bound, bound)
    b = jax.random.uniform(k2, (cout,), jnp.float32, -bound, bound)
    return w, b


def init_gen_params(key, input_nc=3, output_nc=3, n_resblocks=9):
    keys = jax.random.split(key, 6 + 2 * n_resblocks)
    params = {"n_resblocks": n_resblocks}
    params["c0"] = _conv_init(keys[0], 32, input_nc, 7)
    params["c1"] = _conv_init(keys[1], 64, 32, 3)
    params["c2"] = _conv_init(keys[2], 128, 64, 3)
    for r in range(n_resblocks):
        params[f"res{r}_a"] = _conv_init(keys[3 + 2 * r], 128, 128, 3)
        params[f"res{r}_b"] = _conv_init(keys[4 + 2 * r], 128, 128, 3)
    params["ct0"] = _convt_init(keys[3 + 2 * n_resblocks], 128, 64, 3)
    params["ct1"] = _convt_init(keys[4 + 2 * n_resblocks], 64, 32, 3)
    params["c3"] = _conv_init(keys[5 + 2 * n_resblocks], output_nc, 32, 7)
    return params


def _prep_conv_weights(w, b):
    # Conv2d (O, C, kh, kw) -> GEMM (kh*kw*C, Np) bf16 (K unpadded) + (1, Np) f32.
    o, c, kh, kw = w.shape
    np_ = _round_up(o, 128)
    wmat = jnp.transpose(w, (2, 3, 1, 0)).reshape(kh * kw * c, o)
    wmat = jnp.pad(wmat, ((0, 0), (0, np_ - o))).astype(jnp.bfloat16)
    bias = jnp.pad(b, (0, np_ - o)).astype(jnp.float32)[None, :]
    return {"w": wmat, "b": bias, "kh": kh, "kw": kw, "n_out": o}


def _prep_res_weights(w, b):
    # Conv2d (128, 128, 3, 3) -> per-tap weights (9, C, O) bf16 for the fused kernel.
    o, c, kh, kw = w.shape
    wt = jnp.transpose(w, (2, 3, 1, 0)).reshape(kh * kw, c, o).astype(jnp.bfloat16)
    return {"w": wt, "b": b.astype(jnp.float32)[None, :], "n_out": o}


def _prep_convt_subpixel(w, b):
    # ConvTranspose2d (Cin, Cout, 3, 3) s=2 p=1 op=1 -> sub-pixel GEMM weight
    # (4*Cin, 4*Cout): N column ((py*2+px)*Cout + co) is the (py, px) sub-pixel
    # plane; K column ((dy*2+dx)*Cin + ci) matches a 2x2 im2col of the
    # bottom/right zero-padded input.
    cin, cout, kh, kw = w.shape
    wg = jnp.zeros((2, 2, cin, 2, 2, cout), w.dtype)
    for dy in range(2):
        for dx in range(2):
            for py in range(2):
                for px in range(2):
                    ky, kx = py + 1 - 2 * dy, px + 1 - 2 * dx
                    if 0 <= ky < kh and 0 <= kx < kw:
                        wg = wg.at[dy, dx, :, py, px, :].set(w[:, :, ky, kx])
    n_out = 4 * cout
    np_ = _round_up(n_out, 128)
    wmat = jnp.pad(wg.reshape(4 * cin, n_out),
                   ((0, 0), (0, np_ - n_out))).astype(jnp.bfloat16)
    bias = jnp.pad(jnp.tile(b, 4), (0, np_ - n_out)).astype(jnp.float32)[None, :]
    return {"w": wmat, "b": bias, "cout": cout, "n_out": n_out}


def prepare_gen_params(raw):
    prep = {"n_resblocks": raw["n_resblocks"]}
    for name in ("c0", "c1", "c2", "c3"):
        prep[name] = _prep_conv_weights(*raw[name])
    for r in range(raw["n_resblocks"]):
        prep[f"res{r}_a"] = _prep_res_weights(*raw[f"res{r}_a"])
        prep[f"res{r}_b"] = _prep_res_weights(*raw[f"res{r}_b"])
    prep["ct0"] = _prep_convt_subpixel(*raw["ct0"])
    prep["ct1"] = _prep_convt_subpixel(*raw["ct1"])
    return prep


# -------------------------------- forward ------------------------------------
def gen_forward(prep, x_nchw, use_pallas=True):
    mm = pallas_matmul if use_pallas else ref_matmul
    x = jnp.transpose(x_nchw, (0, 2, 3, 1)).astype(jnp.bfloat16)   # NCHW -> NHWC
    x = conv2d_gemm(x, prep["c0"], pad=3, pad_mode="reflect",
                    activation="relu", matmul_fn=mm)
    x = conv2d_gemm(x, prep["c1"], stride=2, pad=1, activation="relu", matmul_fn=mm)
    x = conv2d_gemm(x, prep["c2"], stride=2, pad=1, activation="relu", matmul_fn=mm)
    for r in range(prep["n_resblocks"]):
        h = res_conv3x3(x, prep[f"res{r}_a"], activation="relu",
                        use_pallas=use_pallas)
        x = res_conv3x3(h, prep[f"res{r}_b"], residual=x, activation="none",
                        use_pallas=use_pallas)
    x = conv_transpose_subpixel(x, prep["ct0"], activation="relu", matmul_fn=mm)
    x = conv_transpose_subpixel(x, prep["ct1"], activation="relu", matmul_fn=mm)
    x = conv2d_gemm(x, prep["c3"], pad=3, pad_mode="reflect",
                    activation="tanh", matmul_fn=mm)
    return jnp.transpose(x, (0, 3, 1, 2)).astype(jnp.float32)       # NHWC -> NCHW


# --------------------- independent f32 reference (lax.conv) ------------------
def _conv_f32(x, w, b, stride=1, pad=0, pad_mode="constant"):
    if pad > 0:
        x = jnp.pad(x, ((0, 0), (pad, pad), (pad, pad), (0, 0)), mode=pad_mode)
    w_hwio = jnp.transpose(w, (2, 3, 1, 0))
    out = lax.conv_general_dilated(x, w_hwio, (stride, stride), "VALID",
                                   dimension_numbers=("NHWC", "HWIO", "NHWC"))
    return out + b


def _convt_f32(x, w, b):
    # ConvTranspose2d(k=3, s=2, p=1, op=1) via zero-insertion conv with the
    # flipped / channel-swapped kernel (independent of the sub-pixel path).
    w_eq = jnp.transpose(jnp.flip(w, axis=(2, 3)), (1, 0, 2, 3))
    w_hwio = jnp.transpose(w_eq, (2, 3, 1, 0))
    out = lax.conv_general_dilated(x, w_hwio, (1, 1), [(1, 2), (1, 2)],
                                   lhs_dilation=(2, 2),
                                   dimension_numbers=("NHWC", "HWIO", "NHWC"))
    return out + b


def _bf16_round(w):
    # share the bf16 weight rounding with the kernel path (activations stay f32)
    return w.astype(jnp.bfloat16).astype(jnp.float32)


def gen_forward_f32(raw, x_nchw):
    def cw(name):
        w, b = raw[name]
        return _bf16_round(w), b.astype(jnp.float32)

    relu = lambda v: jnp.maximum(v, 0.0)
    x = jnp.transpose(x_nchw, (0, 2, 3, 1)).astype(jnp.float32)
    x = relu(_conv_f32(x, *cw("c0"), pad=3, pad_mode="reflect"))
    x = relu(_conv_f32(x, *cw("c1"), stride=2, pad=1))
    x = relu(_conv_f32(x, *cw("c2"), stride=2, pad=1))
    for r in range(raw["n_resblocks"]):
        h = relu(_conv_f32(x, *cw(f"res{r}_a"), pad=1, pad_mode="reflect"))
        x = x + _conv_f32(h, *cw(f"res{r}_b"), pad=1, pad_mode="reflect")
    x = relu(_convt_f32(x, *cw("ct0")))
    x = relu(_convt_f32(x, *cw("ct1")))
    x = jnp.tanh(_conv_f32(x, *cw("c3"), pad=3, pad_mode="reflect"))
    return jnp.transpose(x, (0, 3, 1, 2))


# --------------------------------- main ---------------------------------------
if __name__ == "__main__":
    key = jax.random.PRNGKey(0)
    pkey, xkey = jax.random.split(key)
    raw_params = init_gen_params(pkey, input_nc=3, output_nc=3, n_resblocks=9)
    params = prepare_gen_params(raw_params)
    x = jax.random.normal(xkey, (2, 3, 16, 16), jnp.float32)

    out = jax.block_until_ready(gen_forward(params, x, use_pallas=True))
    ref = jax.block_until_ready(gen_forward(params, x, use_pallas=False))
    ref32 = jax.block_until_ready(gen_forward_f32(raw_params, x))

    assert out.shape == (2, 3, 16, 16), out.shape
    assert bool(jnp.all(jnp.isfinite(out)))
    # tight: Pallas kernels vs. a jnp reference with the same bf16/f32 numerics
    assert bool(jnp.allclose(out, ref, atol=5e-3, rtol=5e-3)), \
        float(jnp.max(jnp.abs(out - ref)))
    # loose: semantic check vs. an independent f32 lax.conv reference
    assert bool(jnp.allclose(out, ref32, atol=3e-2, rtol=3e-2)), \
        float(jnp.max(jnp.abs(out - ref32)))
    print("KERNEL_OK")
</pallas_src>

<mosaic_0001>
module attributes {stable_mosaic.version = 11 : i64} {
  func.func @_matmul_kernel(%arg0: i32, %arg1: memref<256x147xbf16, #tpu.memory_space<vmem>>, %arg2: memref<147x128xbf16, #tpu.memory_space<vmem>>, %arg3: memref<1x128xf32, #tpu.memory_space<vmem>>, %arg4: memref<256x128xbf16, #tpu.memory_space<vmem>>) attributes {dimension_semantics = [#tpu.dimension_semantics<parallel>], iteration_bounds = array<i64: 2>, scalar_prefetch = 0 : i64, scratch_operands = 0 : i64, tpu.core_type = #tpu.core_type<tc>, window_params = [{transform_indices = @transform_0, window_bounds = array<i64: 256, 147>}, {pipeline_mode = #tpu.pipeline_mode<synchronous>, transform_indices = @transform_1, window_bounds = array<i64: 147, 128>}, {pipeline_mode = #tpu.pipeline_mode<synchronous>, transform_indices = @transform_2, window_bounds = array<i64: 1, 128>}, {transform_indices = @transform_3, window_bounds = array<i64: 256, 128>}]} {
    %c0 = arith.constant 0 : index
    %c0_0 = arith.constant 0 : index
    %0 = vector.load %arg1[%c0, %c0_0] : memref<256x147xbf16, #tpu.memory_space<vmem>>, vector<256x147xbf16>
    %c0_1 = arith.constant 0 : index
    %c0_2 = arith.constant 0 : index
    %1 = vector.load %arg2[%c0_1, %c0_2] : memref<147x128xbf16, #tpu.memory_space<vmem>>, vector<147x128xbf16>
    %cst = arith.constant dense<0.000000e+00> : vector<256x128xf32>
    %2 = tpu.matmul %0, %1, %cst {dimension_numbers = #tpu.dot_dimension_numbers<[1], [0], [0], [1], [0, 0, 1, 1], [], []>} : vector<256x147xbf16>, vector<147x128xbf16>, vector<256x128xf32> -> vector<256x128xf32>
    %c0_3 = arith.constant 0 : index
    %c0_4 = arith.constant 0 : index
    %3 = vector.load %arg3[%c0_3, %c0_4] : memref<1x128xf32, #tpu.memory_space<vmem>>, vector<1x128xf32>
    %4 = vector.broadcast %3 : vector<1x128xf32> to vector<256x128xf32>
    %5 = arith.addf %2, %4 : vector<256x128xf32>
    %cst_5 = arith.constant 0.000000e+00 : f32
    %6 = vector.broadcast %cst_5 : f32 to vector<256x128xf32>
    %7 = arith.maximumf %5, %6 : vector<256x128xf32>
    %8 = arith.truncf %7 : vector<256x128xf32> to vector<256x128xbf16>
    %c0_6 = arith.constant 0 : index
    %c0_7 = arith.constant 0 : index
    %9 = vector.load %arg4[%c0_6, %c0_7] : memref<256x128xbf16, #tpu.memory_space<vmem>>, vector<256x128xbf16>
    tpu.vector_store %arg4[%c0_6, %c0_7], %8 {strides = array<i32>} : memref<256x128xbf16, #tpu.memory_space<vmem>>, vector<256x128xbf16>,
    return
  }
  func.func @transform_0(%arg0: i32) -> (i32, i32) {
    %c0_i32 = arith.constant 0 : i32
    %c0_i32_0 = arith.constant 0 : i32
    return %arg0, %c0_i32 : i32, i32
  }
  func.func @transform_1(%arg0: i32) -> (i32, i32) {
    %c0_i32 = arith.constant 0 : i32
    %c0_i32_0 = arith.constant 0 : i32
    %c0_i32_1 = arith.constant 0 : i32
    return %c0_i32, %c0_i32_0 : i32, i32
  }
  func.func @transform_2(%arg0: i32) -> (i32, i32) {
    %c0_i32 = arith.constant 0 : i32
    %c0_i32_0 = arith.constant 0 : i32
    %c0_i32_1 = arith.constant 0 : i32
    return %c0_i32, %c0_i32_0 : i32, i32
  }
  func.func @transform_3(%arg0: i32) -> (i32, i32) {
    %c0_i32 = arith.constant 0 : i32
    %c0_i32_0 = arith.constant 0 : i32
    return %arg0, %c0_i32 : i32, i32
  }
}

</mosaic_0001>

<bundles_post_ra>
// kernel: tpu_custom_call.1
= control target key start
LH: loop header
LB: loop body
LE: loop exit
PB: predicated region body
PF: predicated region fallthrough
CT: control target
= control target key end

     0   :  { %8 = vsyncpa [#allocation3], 0  ;;  %s1573_s0 = inlined_call_operand.vmem [shape: bf16[512,147], index: 0, kind: input, shape index: {}]   ;;  %s1574_s1 = inlined_call_operand.vmem [shape: bf16[147,128], index: 1, kind: input, shape index: {}]   ;;  %s1575_s2 = inlined_call_operand.vmem [shape: f32[1,128], index: 2, kind: input, shape index: {}]   ;;  %s1576_s3 = inlined_call_operand.hbm [shape: bf16[512,128], index: 3, kind: output, shape index: {}]  }
   0x1   :  { %10 = vsyncpa [#allocation3 + $0x1], 0  ;;  %s1311_s12 = smov 0   ;;  %s1313_s13 = smov 0  }
   0x2   :  { %s1315_s14 = smov 0   ;;  %s1317_s15 = smov 0  }
   0x3 LB: > { %s1332_s16 = sadd.s32 4294967295, %s1286_s15   ;;  %s840_s17 = sadd.s32 4294967294, %s1286_s15   ;;  %s1286_s15 = sphi %s1317_s15, %s1582_s15   ;;  %s1282_s14 = sphi %s1315_s14, %s1581_s14   ;;  %s1278_s13 = sphi %s1313_s13, %s1580_s13   ;;  %s1274_s12 = sphi %s1311_s12, %s1579_s12  }
   0x4   : > { %s1336_s18 = sadd.s32 1, %s1286_s15   ;;  %s91_s19 = sadd.s32 1, %s1282_s14 }
   0x5   : > { %s88_s20 = ssub.s32 %s1286_s15, %s1336_s18  ;;  %p101_p0 = scmp.ne.s32.totalorder %s1282_s14, %s1278_s13 }
   0x6   : > { %p89_p1 = scmp.eq.s32.totalorder %s88_s20, 0  ;;  %p102_p2 = scmp.eq.s32.totalorder %s1332_s16, 1 }
   0x7   : > { %p107_p3 = scmp.ne.s32.totalorder %s1278_s13, %s1274_s12  ;;  %p108_p4 = scmp.eq.s32.totalorder %s840_s17, 1 }
   0x8   : > { %s1347_s21 = scalar_select %p89_p1, %s1282_s14, %s91_s19  }
   0x9   : > { %p1349_p5 = por %p102_p2, %p101_p0  ;;  %p1353_p6 = por %p108_p4, %p107_p3 }
   0xa   : > { %p843_p7 = scmp.ge.s32.totalorder %s1286_s15, 1  ;;  %p142_p8 = scmp.lt.s32.totalorder %s1286_s15, 3 }
   0xc   : > { %p143_p9 = pnand %p843_p7, %p142_p8 }
   0xd   : > { %s845_s28 = sshll.u32 (!%p143_p9), %s1332_s16, 5  ;;  %s1075_s9 = sshll.u32 (!%p143_p9), %s1332_s16, 7 }
   0xe   : > { %146 = sbr.rel (%p143_p9) target bundleno = 315 (0x13b), region = 32  ;;  %p168_p10 = scmp.lt.s32.totalorder (!%p143_p9), %s845_s28, 63 }
   0xf   : > { %s774_s17 = scalar_lea.hbm (!%p143_p9), %s1576_s3, %s1075_s9 }
  0x10   : > { %s777_s20 = sshll.u32 (!%p143_p9), %s774_s17, 4  ;;  %s778_s20 = int_to_ptr.hbm [resolvable:$true] %s777_s20 }
  0x11   : > { %s1238_s24 = sshra.s32 (!%p143_p9), %s778_s20, 4  ;;  %s1239_s24 = int_to_ptr.hbm [resolvable:$true] %s1238_s24 }
  0x12   : > { %s1240_s25 = scalar_lea.hbm (!%p143_p9), %s1239_s24, 128  ;;  %p1245_p0 = scmp.lt.s32.totalorder (!%p143_p9), %s1239_s24, %s1576_s3 }
  0x13   : > { %v1073_v0 = vld [vmem:[%s1574_s1 + $0x38] sm:$0xff]  ;;  %v226_v1 = vld [vmem:[%s1574_s1 + $0x48] sm:$0x3]  ;;  %vm481_vm0 = vcmask 1040384   ;;  %vm482_vm1 = vcmask 1041408   ;;  %v1072_v3 = vld [vmem:[%s1574_s1 + $0x30] sm:$0xff]  ;;  %p1241_p11 = scmp.ne.s32.totalorder %s1239_s24, %s1240_s25 }
  0x14   : > { %v412_v2 = vunpack.c.l.b16 %v226_v1  ;;  %488 = vmatpush.bf16.msra.mxu0 %v1073_v0  ;;  %1171 = vmatpush.bf16.msra.mxu2 %v1073_v0  ;;  %v1288_v4 = vmov 65535   ;;  %s1584_s28 = smov (!%p168_p10, %s845_s28), 63  ;;  %v1071_v9 = vld [vmem:[%s1574_s1 + $0x28] sm:$0xff]  ;;  %v1074_v10 = vld [vmem:[%s1574_s1 + $0x40] sm:$0xff]  ;;  %vm432_vm2 = vcmask 154624   ;;  %v1069_v18 = vld [vmem:[%s1574_s1 + $0x18] sm:$0xff] }
  0x15   : > { %v483_v5 = vsel %vm481_vm0, 4294967295, %v1288_v4  ;;  %s1033_s6 = sshll.u32 %s1584_s28, 3  ;;  %v1070_v14 = vld [vmem:[%s1574_s1 + $0x20] sm:$0xff]  ;;  %v1068_v19 = vld [vmem:[%s1574_s1 + $0x10] sm:$0xff]  ;;  %v1067_v20 = vld [vmem:[%s1574_s1 + $0x8] sm:$0xff]  ;;  %p1242_p12 = pnand %p1241_p11, %p1349_p5 }
  0x16   : > { %v422_v6 = vpack.c.b16 %v412_v2, %v412_v2  ;;  %v484_v7 = vsel %vm482_vm1, %v483_v5, 0  ;;  %s1378_s11 = scalar_lea.vmem %s1573_s0, %s1033_s6  ;;  %v1066_v26 = vld [vmem:[%s1574_s1] sm:$0xff]  ;;  %s164_s6 = sand.u32 1, %s1278_s13  }
  0x17   : > { %v1034_v11 = vld [vmem:[%s1378_s11 + $0x4] sm:$0xf]  ;;  %v852_v12 = vld [vmem:[%s1378_s11 + $0x8] sm:$0xf0]  ;;  %v1052_v15 = vld [vmem:[%s1378_s11 + $0x94] sm:$0xf]  ;;  %p1243_p13 = pneg %p1242_p12 }
  0x18   : > { %v486_v8 = vand.u32 %v484_v7, %v422_v6  ;;  %489 = vmatpush.bf16.msra.mxu0 %v1072_v3  ;;  %1172 = vmatpush.bf16.msra.mxu2 %v1072_v3  ;;  %v855_v13 = vor.u32 %v1034_v11, %v852_v12  ;;  %v924_v16 = vld [vmem:[%s1378_s11 + $0x98] sm:$0xf0]  ;;  %v1036_v21 = vld [vmem:[%s1378_s11 + $0x14] sm:$0xf]  ;;  %v1054_v23 = vld [vmem:[%s1378_s11 + $0xa4] sm:$0xf] }
  0x19   : > { %v927_v17 = vor.u32 %v1052_v15, %v924_v16  ;;  %v860_v22 = vld [vmem:[%s1378_s11 + $0x18] sm:$0xf0]  ;;  %v932_v24 = vld [vmem:[%s1378_s11 + $0xa8] sm:$0xf0]  ;;  %v850_v27 = vld [vmem:[%s1378_s11] sm:$0xf] }
  0x1a   : > { %583 = vmatpush.bf16.msra.mxu1 %v486_v8  ;;  %1179 = vmatpush.bf16.msra.mxu3 %v486_v8  ;;  %v863_v25 = vor.u32 %v1036_v21, %v860_v22  ;;  %v1035_v28 = vld [vmem:[%s1378_s11 + $0x4] sm:$0xf0]  ;;  %v914_v29 = vld [vmem:[%s1378_s11 + $0x80] sm:$0xf]  ;;  %v935_v31 = vor.u32 %v1054_v23, %v932_v24  ;;  %v1038_v34 = vld [vmem:[%s1378_s11 + $0x24] sm:$0xf] }
  0x1b   : > { %v1051_v30 = vld [vmem:[%s1378_s11 + $0x84] sm:$0xf0]  ;;  %v851_v32 = vor.u32 %v1035_v28, %v850_v27  ;;  %v868_v35 = vld [vmem:[%s1378_s11 + $0x28] sm:$0xf0]  ;;  %v1056_v36 = vld [vmem:[%s1378_s11 + $0xb4] sm:$0xf] }
  0x1c   : > { %490 = vmatpush.bf16.msra.mxu0 %v1071_v9  ;;  %1173 = vmatpush.bf16.msra.mxu2 %v1071_v9  ;;  %v915_v33 = vor.u32 %v1051_v30, %v914_v29  ;;  %v940_v37 = vld [vmem:[%s1378_s11 + $0xb8] sm:$0xf0]  ;;  %v871_v38 = vor.u32 %v1038_v34, %v868_v35  ;;  %v858_v39 = vld [vmem:[%s1378_s11 + $0x10] sm:$0xf]  ;;  %v1037_v40 = vld [vmem:[%s1378_s11 + $0x14] sm:$0xf0] }
  0x1d   : > { %v922_v41 = vld [vmem:[%s1378_s11 + $0x90] sm:$0xf]  ;;  %v1053_v42 = vld [vmem:[%s1378_s11 + $0x94] sm:$0xf0]  ;;  %v943_v43 = vor.u32 %v1056_v36, %v940_v37  ;;  %v859_v44 = vor.u32 %v1037_v40, %v858_v39  ;;  %v1040_v46 = vld [vmem:[%s1378_s11 + $0x34] sm:$0xf] }
  0x1e   : > { %584 = vmatpush.bf16.msra.mxu1 %v1074_v10  ;;  %1180 = vmatpush.bf16.msra.mxu3 %v1074_v10  ;;  %v923_v45 = vor.u32 %v1053_v42, %v922_v41  ;;  %v876_v47 = vld [vmem:[%s1378_s11 + $0x38] sm:$0xf0]  ;;  %v1058_v48 = vld [vmem:[%s1378_s11 + $0xc4] sm:$0xf]  ;;  %v948_v49 = vld [vmem:[%s1378_s11 + $0xc8] sm:$0xf0] }
  0x1f   : > { %v879_v50 = vor.u32 %v1040_v46, %v876_v47  ;;  %v866_v51 = vld [vmem:[%s1378_s11 + $0x20] sm:$0xf]  ;;  %v1039_v52 = vld [vmem:[%s1378_s11 + $0x24] sm:$0xf0]  ;;  %v951_v55 = vor.u32 %v1058_v48, %v948_v49  ;;  %v1042_v58 = vld [vmem:[%s1378_s11 + $0x44] sm:$0xf] }
  0x20   : > { %491 = vmatpush.bf16.msra.mxu0 %v1070_v14  ;;  %1174 = vmatpush.bf16.msra.mxu2 %v1070_v14  ;;  %v930_v53 = vld [vmem:[%s1378_s11 + $0xa0] sm:$0xf]  ;;  %v1055_v54 = vld [vmem:[%s1378_s11 + $0xa4] sm:$0xf0]  ;;  %v867_v56 = vor.u32 %v1039_v52, %v866_v51  ;;  %v884_v59 = vld [vmem:[%s1378_s11 + $0x48] sm:$0xf0] }
  0x21   : > { %1012 = vmatmul.msk.bf16.vlgmr.msra.gmra.mxu1 %vm432_vm2, %v855_v13  ;;  %1021 = vmatmul.msk.bf16.vlgmr.msra.gmra.mxu3 %vm432_vm2, %v927_v17  ;;  %v931_v57 = vor.u32 %v1055_v54, %v930_v53  ;;  %v1060_v60 = vld [vmem:[%s1378_s11 + $0xd4] sm:$0xf]  ;;  %v956_v61 = vld [vmem:[%s1378_s11 + $0xd8] sm:$0xf0]  ;;  %v887_v62 = vor.u32 %v1042_v58, %v884_v59  ;;  %v874_v63 = vld [vmem:[%s1378_s11 + $0x30] sm:$0xf] }
  0x22   : > { %v1041_v0 = vld [vmem:[%s1378_s11 + $0x34] sm:$0xf0]  ;;  %v938_v1 = vld [vmem:[%s1378_s11 + $0xb0] sm:$0xf]  ;;  %v959_v3 = vor.u32 %v1060_v60, %v956_v61  ;;  %v1044_v6 = vld [vmem:[%s1378_s11 + $0x54] sm:$0xf] }
  0x23   : > { %v1057_v2 = vld [vmem:[%s1378_s11 + $0xb4] sm:$0xf0]  ;;  %v875_v4 = vor.u32 %v1041_v0, %v874_v63  ;;  %v892_v7 = vld [vmem:[%s1378_s11 + $0x58] sm:$0xf0]  ;;  %v1062_v8 = vld [vmem:[%s1378_s11 + $0xe4] sm:$0xf] }
  0x24   : > { %492 = vmatpush.bf16.msra.mxu0 %v1069_v18  ;;  %1175 = vmatpush.bf16.msra.mxu2 %v1069_v18  ;;  %v939_v5 = vor.u32 %v1057_v2, %v938_v1  ;;  %v964_v9 = vld [vmem:[%s1378_s11 + $0xe8] sm:$0xf0]  ;;  %v895_v10 = vor.u32 %v1044_v6, %v892_v7  ;;  %v882_v11 = vld [vmem:[%s1378_s11 + $0x40] sm:$0xf]  ;;  %v1043_v12 = vld [vmem:[%s1378_s11 + $0x44] sm:$0xf0] }
  0x25   : > { %v946_v13 = vld [vmem:[%s1378_s11 + $0xc0] sm:$0xf]  ;;  %v1059_v14 = vld [vmem:[%s1378_s11 + $0xc4] sm:$0xf0]  ;;  %v967_v15 = vor.u32 %v1062_v8, %v964_v9  ;;  %v883_v16 = vor.u32 %v1043_v12, %v882_v11  ;;  %v1046_v18 = vld [vmem:[%s1378_s11 + $0x64] sm:$0xf] }
  0x26   : > { %v947_v17 = vor.u32 %v1059_v14, %v946_v13  ;;  %v972_v21 = vld [vmem:[%s1378_s11 + $0xf8] sm:$0xf0]  ;;  %v890_v23 = vld [vmem:[%s1378_s11 + $0x50] sm:$0xf]  ;;  %v1045_v24 = vld [vmem:[%s1378_s11 + $0x54] sm:$0xf0] }
  0x27   : > { %v891_v28 = vor.u32 %v1045_v24, %v890_v23  ;;  %v1048_v30 = vld [vmem:[%s1378_s11 + $0x74] sm:$0xf]  ;;  %v1047_v34 = vld [vmem:[%s1378_s11 + $0x64] sm:$0xf0]  ;;  %v962_v35 = vld [vmem:[%s1378_s11 + $0xe0] sm:$0xf] }
  0x28   : > { %493 = vmatpush.bf16.msra.mxu0 %v1068_v19  ;;  %1176 = vmatpush.bf16.msra.mxu2 %v1068_v19  ;;  %v900_v19 = vld [vmem:[%s1378_s11 + $0x68] sm:$0xf0]  ;;  %v1063_v36 = vld [vmem:[%s1378_s11 + $0xe4] sm:$0xf0]  ;;  %v1050_v39 = vld [vmem:[%s1378_s11 + $0x84] sm:$0xf] }
  0x29   : > { %v903_v22 = vor.u32 %v1046_v18, %v900_v19  ;;  %v916_v40 = vld [vmem:[%s1378_s11 + $0x88] sm:$0xf0]  ;;  %v906_v42 = vld [vmem:[%s1378_s11 + $0x70] sm:$0xf]  ;;  %v1065_v46 = vld [vmem:[%s1378_s11 + $0xf4] sm:$0xf0] }
  0x2a   : > { %v919_v41 = vor.u32 %v1050_v39, %v916_v40  ;;  %v1478_v53 = vld [vmem:[%s1575_s2] ss:$0 sm:$0xff]  ;;  %s844_s7 = sshll.u32 %s164_s6, 7  ;;  %s763_s16 = scalar_lea.sflag [#allocation3], %s164_s6 }
  0x2b   : > { %s1489_s8 = scalar_lea.vmem [#allocation2], %s844_s7  ;;  %s1244_s28 = scalar_lea.hbm %s1576_s3, 256 }
  0x2c   : > { %494 = vmatpush.bf16.msra.mxu0 %v1067_v20  ;;  %1177 = vmatpush.bf16.msra.mxu2 %v1067_v20  ;;  %v1064_v20 = vld [vmem:[%s1378_s11 + $0xf4] sm:$0xf]  ;;  %s775_s19 = sshll.u32 %s1489_s8, 4  ;;  %p1246_p1 = scmp.lt.s32.totalorder %s1244_s28, %s1240_s25  ;;  %s776_s19 = int_to_ptr.vmem [resolvable:$true] %s775_s19 }
  0x2d   : > { %v975_v27 = vor.u32 %v1064_v20, %v972_v21 }
  0x2e   : > { %p1247_p2 = por %p1246_p1, %p1245_p0 }
  0x30   : > { %495 = vmatpush.bf16.msra.mxu0 %v1066_v26  ;;  %1178 = vmatpush.bf16.msra.mxu2 %v1066_v26  ;;  %v1061_v26 = vld [vmem:[%s1378_s11 + $0xd4] sm:$0xf0]  ;;  %p1248_p3 = pnand %p1247_p2, %p1243_p13 }
  0x31   : > { %1013 = vmatmul.msk.bf16.gmra.mxu1 %vm432_vm2, %v863_v25  ;;  %1022 = vmatmul.msk.bf16.gmra.mxu3 %vm432_vm2, %v935_v31  ;;  %v954_v25 = vld [vmem:[%s1378_s11 + $0xd0] sm:$0xf]  ;;  %v908_v31 = vld [vmem:[%s1378_s11 + $0x78] sm:$0xf0] }
  0x32   : > { %v955_v29 = vor.u32 %v1061_v26, %v954_v25 }
  0x33   : > { %496 = vmatmul.bf16.vlgmr.msra.gmra.mxu0 %v851_v32  ;;  %536 = vmatmul.bf16.vlgmr.msra.gmra.mxu2 %v915_v33  ;;  %v911_v32 = vor.u32 %v1048_v30, %v908_v31  ;;  %v898_v33 = vld [vmem:[%s1378_s11 + $0x60] sm:$0xf] }
  0x34   : > { %v899_v37 = vor.u32 %v1047_v34, %v898_v33 }
  0x41   : > { %1014 = vmatmul.msk.bf16.gmra.mxu1 %vm432_vm2, %v871_v38  ;;  %1023 = vmatmul.msk.bf16.gmra.mxu3 %vm432_vm2, %v943_v43  ;;  %v963_v38 = vor.u32 %v1063_v36, %v962_v35  ;;  %v1049_v43 = vld [vmem:[%s1378_s11 + $0x74] sm:$0xf0] }
  0x42   : > { %v907_v47 = vor.u32 %v1049_v43, %v906_v42 }
  0x43   : > { %501 = vmatmul.bf16.gmra.mxu0 %v859_v44  ;;  %541 = vmatmul.bf16.gmra.mxu2 %v923_v45  ;;  %v970_v45 = vld [vmem:[%s1378_s11 + $0xf0] sm:$0xf] }
  0x44   : > { %v971_v48 = vor.u32 %v1065_v46, %v970_v45 }
  0x51   : > { %1015 = vmatmul.msk.bf16.gmra.mxu1 %vm432_vm2, %v879_v50  ;;  %1024 = vmatmul.msk.bf16.gmra.mxu3 %vm432_vm2, %v951_v55 }
  0x53   : > { %506 = vmatmul.bf16.gmra.mxu0 %v867_v56  ;;  %546 = vmatmul.bf16.gmra.mxu2 %v931_v57 }
  0x61   : > { %1016 = vmatmul.msk.bf16.gmra.mxu1 %vm432_vm2, %v887_v62  ;;  %1025 = vmatmul.msk.bf16.gmra.mxu3 %vm432_vm2, %v959_v3 }
  0x63   : > { %511 = vmatmul.bf16.gmra.mxu0 %v875_v4  ;;  %551 = vmatmul.bf16.gmra.mxu2 %v939_v5 }
  0x71   : > { %1017 = vmatmul.msk.bf16.gmra.mxu1 %vm432_vm2, %v895_v10  ;;  %1026 = vmatmul.msk.bf16.gmra.mxu3 %vm432_vm2, %v967_v15 }
  0x73   : > { %516 = vmatmul.bf16.gmra.mxu0 %v883_v16  ;;  %556 = vmatmul.bf16.gmra.mxu2 %v947_v17 }
  0x81   : > { %1018 = vmatmul.msk.bf16.gmra.mxu1 %vm432_vm2, %v903_v22  ;;  %1027 = vmatmul.msk.bf16.gmra.mxu3 %vm432_vm2, %v975_v27 }
  0x83   : > { %521 = vmatmul.bf16.gmra.mxu0 %v891_v28  ;;  %561 = vmatmul.bf16.gmra.mxu2 %v955_v29 }
  0x91   : > { %1019 = vmatmul.msk.bf16.gmra.mxu1 %vm432_vm2, %v911_v32 }
  0x93   : > { %526 = vmatmul.bf16.gmra.mxu0 %v899_v37  ;;  %566 = vmatmul.bf16.gmra.mxu2 %v963_v38 }
  0x9e   : > { %v586_v44 = vpop.f32.mrf.mxu1 }
  0xa1   : > { %1020 = vmatmul.msk.bf16.gmra.mxu1 %vm432_vm2, %v919_v41 }
  0xa3   : > { %531 = vmatmul.bf16.gmra.mxu0 %v907_v47  ;;  %571 = vmatmul.bf16.gmra.mxu2 %v971_v48 }
  0xa4   : > { %v631_v51 = vpop.f32.mrf.mxu3 }
  0xa6   : > { %v588_v49 = vpop.f32.mrf.mxu1 }
  0xac   : > { %v633_v60 = vpop.f32.mrf.mxu3 }
  0xae   : > { %v591_v50 = vpop.f32.mrf.mxu1 }
  0xb0   : > { %v497_v52 = vpop.f32.mrf.mxu0 }
  0xb1   : > { %v498_v54 = vadd.f32 %v1478_v53, %v497_v52 }
  0xb3   : > { %v587_v58 = vadd.f32 %v586_v44, %v498_v54 }
  0xb4   : > { %v636_v4 = vpop.f32.mrf.mxu3 }
  0xb5   : > { %v666_v62 = vmax.f32 %v587_v58, 0.0 }
  0xb6   : > { %v593_v55 = vpop.f32.mrf.mxu1  ;;  %v1481_v56 = vpop.f32.mrf.mxu2 }
  0xb8   : > { %v499_v57 = vpop.f32.mrf.mxu0 }
  0xb9   : > { %v500_v59 = vadd.f32 %v1478_v53, %v499_v57 }
  0xbb   : > { %v589_v61 = vadd.f32 %v588_v49, %v500_v59 }
  0xbc   : > { %v638_v16 = vpop.f32.mrf.mxu3 }
  0xbd   : > { %v667_v63 = vmax.f32 %v589_v61, 0.0 }
  0xbe   : > { %v596_v0 = vpop.f32.mrf.mxu1  ;;  %v1487_v2 = vpop.f32.mrf.mxu2 }
  0xbf   : > { %v1079_v1 = vpack.c.bf16 %v667_v63, %v666_v62 }
  0xc0   : > { %v502_v3 = vpop.f32.mrf.mxu0 }
  0xc1   : > { %1080 = vst [vmem:[%s1489_s8] sm:$0xff] %v1079_v1   ;;  %v503_v5 = vadd.f32 %v1478_v53, %v502_v3 }
  0xc3   : > { %v592_v9 = vadd.f32 %v591_v50, %v503_v5 }
  0xc4   : > { %v641_v29 = vpop.f32.mrf.mxu3 }
  0xc5   : > { %v668_v13 = vmax.f32 %v592_v9, 0.0 }
  0xc6   : > { %v598_v6 = vpop.f32.mrf.mxu1  ;;  %v542_v7 = vpop.f32.mrf.mxu2 }
  0xc7   : > { %v543_v12 = vadd.f32 %v1478_v53, %v542_v7 }
  0xc8   : > { %v504_v8 = vpop.f32.mrf.mxu0 }
  0xc9   : > { %v505_v10 = vadd.f32 %v1478_v53, %v504_v8  ;;  %v632_v19 = vadd.f32 %v631_v51, %v543_v12 }
  0xcb   : > { %v594_v11 = vadd.f32 %v593_v55, %v505_v10  ;;  %v684_v23 = vmax.f32 %v632_v19, 0.0 }
  0xcc   : > { %v643_v43 = vpop.f32.mrf.mxu3 }
  0xcd   : > { %v669_v14 = vmax.f32 %v594_v11, 0.0 }
  0xce   : > { %v601_v15 = vpop.f32.mrf.mxu1  ;;  %v544_v18 = vpop.f32.mrf.mxu2 }
  0xcf   : > { %v1084_v17 = vpack.c.bf16 %v669_v14, %v668_v13  ;;  %v545_v20 = vadd.f32 %v1478_v53, %v544_v18 }
  0xd0   : > { %v507_v21 = vpop.f32.mrf.mxu0 }
  0xd1   : > { %1156 = vst [vmem:[%s1489_s8 + $0x8] sm:$0xff] %v1084_v17   ;;  %v634_v22 = vadd.f32 %v633_v60, %v545_v20  ;;  %v508_v25 = vadd.f32 %v1478_v53, %v507_v21 }
  0xd3   : > { %v685_v24 = vmax.f32 %v634_v22, 0.0  ;;  %v597_v31 = vadd.f32 %v596_v0, %v508_v25 }
  0xd4   : > { %v646_v57 = vpop.f32.mrf.mxu3 }
  0xd5   : > { %v1124_v27 = vpack.c.bf16 %v685_v24, %v684_v23  ;;  %v670_v35 = vmax.f32 %v597_v31, 0.0 }
  0xd6   : > { %v603_v26 = vpop.f32.mrf.mxu1  ;;  %v547_v28 = vpop.f32.mrf.mxu2 }
  0xd7   : > { %1164 = vst [vmem:[%s1489_s8 + $0x48] sm:$0xff] %v1124_v27   ;;  %v548_v34 = vadd.f32 %v1478_v53, %v547_v28 }
  0xd8   : > { %v509_v30 = vpop.f32.mrf.mxu0 }
  0xd9   : > { %v510_v32 = vadd.f32 %v1478_v53, %v509_v30  ;;  %v637_v40 = vadd.f32 %v636_v4, %v548_v34 }
  0xdb   : > { %v599_v33 = vadd.f32 %v598_v6, %v510_v32  ;;  %v686_v45 = vmax.f32 %v637_v40, 0.0 }
  0xdc   : > { %v648_v9 = vpop.f32.mrf.mxu3 }
  0xdd   : > { %v671_v36 = vmax.f32 %v599_v33, 0.0 }
  0xde   : > { %v606_v37 = vpop.f32.mrf.mxu1  ;;  %v549_v39 = vpop.f32.mrf.mxu2 }
  0xdf   : > { %v1089_v38 = vpack.c.bf16 %v671_v36, %v670_v35  ;;  %v550_v41 = vadd.f32 %v1478_v53, %v549_v39 }
  0xe0   : > { %v512_v42 = vpop.f32.mrf.mxu0 }
  0xe1   : > { %1157 = vst [vmem:[%s1489_s8 + $0x10] sm:$0xff] %v1089_v38   ;;  %v639_v44 = vadd.f32 %v638_v16, %v550_v41  ;;  %v513_v47 = vadd.f32 %v1478_v53, %v512_v42 }
  0xe3   : > { %v687_v46 = vmax.f32 %v639_v44, 0.0  ;;  %v602_v52 = vadd.f32 %v601_v15, %v513_v47 }
  0xe4   : > { %v651_v22 = vpop.f32.mrf.mxu3 }
  0xe5   : > { %v1129_v49 = vpack.c.bf16 %v687_v46, %v686_v45  ;;  %v672_v59 = vmax.f32 %v602_v52, 0.0 }
  0xe6   : > { %v608_v48 = vpop.f32.mrf.mxu1  ;;  %v552_v50 = vpop.f32.mrf.mxu2 }
  0xe7   : > { %1165 = vst [vmem:[%s1489_s8 + $0x50] sm:$0xff] %v1129_v49   ;;  %v553_v58 = vadd.f32 %v1478_v53, %v552_v50 }
  0xe8   : > { %v514_v51 = vpop.f32.mrf.mxu0 }
  0xe9   : > { %v515_v54 = vadd.f32 %v1478_v53, %v514_v51  ;;  %v642_v0 = vadd.f32 %v641_v29, %v553_v58 }
  0xeb   : > { %v604_v55 = vadd.f32 %v603_v26, %v515_v54  ;;  %v688_v5 = vmax.f32 %v642_v0, 0.0 }
  0xec   : > { %v653_v36 = vpop.f32.mrf.mxu3 }
  0xed   : > { %v673_v60 = vmax.f32 %v604_v55, 0.0 }
  0xee   : > { %v611_v61 = vpop.f32.mrf.mxu1  ;;  %v554_v63 = vpop.f32.mrf.mxu2 }
  0xef   : > { %v1094_v62 = vpack.c.bf16 %v673_v60, %v672_v59  ;;  %v555_v1 = vadd.f32 %v1478_v53, %v554_v63 }
  0xf0   : > { %v517_v3 = vpop.f32.mrf.mxu0 }
  0xf1   : > { %1158 = vst [vmem:[%s1489_s8 + $0x18] sm:$0xff] %v1094_v62   ;;  %v644_v4 = vadd.f32 %v643_v43, %v555_v1  ;;  %v518_v7 = vadd.f32 %v1478_v53, %v517_v3 }
  0xf3   : > { %v689_v6 = vmax.f32 %v644_v4, 0.0  ;;  %v607_v13 = vadd.f32 %v606_v37, %v518_v7 }
  0xf5   : > { %v1134_v10 = vpack.c.bf16 %v689_v6, %v688_v5  ;;  %v674_v17 = vmax.f32 %v607_v13, 0.0 }
  0xf6   : > { %v613_v8 = vpop.f32.mrf.mxu1  ;;  %v557_v11 = vpop.f32.mrf.mxu2 }
  0xf7   : > { %1166 = vst [vmem:[%s1489_s8 + $0x58] sm:$0xff] %v1134_v10   ;;  %v558_v16 = vadd.f32 %v1478_v53, %v557_v11  ;;  %v540_v10 = vadd.f32 %v1478_v53, %v1487_v2 }
  0xf8   : > { %v519_v12 = vpop.f32.mrf.mxu0 }
  0xf9   : > { %v520_v14 = vadd.f32 %v1478_v53, %v519_v12  ;;  %v647_v23 = vadd.f32 %v646_v57, %v558_v16 }
  0xfb   : > { %v609_v15 = vadd.f32 %v608_v48, %v520_v14  ;;  %v690_v27 = vmax.f32 %v647_v23, 0.0  ;;  %v656_v48 = vpop.f32.mrf.mxu3 }
  0xfd   : > { %v675_v18 = vmax.f32 %v609_v15, 0.0 }
  0xfe   : > { %v616_v19 = vpop.f32.mrf.mxu1  ;;  %v559_v21 = vpop.f32.mrf.mxu2 }
  0xff   : > { %v1099_v20 = vpack.c.bf16 %v675_v18, %v674_v17  ;;  %v560_v24 = vadd.f32 %v1478_v53, %v559_v21 }
 0x100   : > { %v522_v25 = vpop.f32.mrf.mxu0 }
 0x101   : > { %1159 = vst [vmem:[%s1489_s8 + $0x20] sm:$0xff] %v1099_v20   ;;  %v649_v26 = vadd.f32 %v648_v9, %v560_v24  ;;  %v523_v29 = vadd.f32 %v1478_v53, %v522_v25 }
 0x103   : > { %v691_v28 = vmax.f32 %v649_v26, 0.0  ;;  %v612_v34 = vadd.f32 %v611_v61, %v523_v29  ;;  %v658_v0 = vpop.f32.mrf.mxu3 }
 0x105   : > { %v1139_v31 = vpack.c.bf16 %v691_v28, %v690_v27  ;;  %v676_v39 = vmax.f32 %v612_v34, 0.0 }
 0x106   : > { %v618_v30 = vpop.f32.mrf.mxu1  ;;  %v562_v32 = vpop.f32.mrf.mxu2 }
 0x107   : > { %1167 = vst [vmem:[%s1489_s8 + $0x60] sm:$0xff] %v1139_v31   ;;  %v563_v38 = vadd.f32 %v1478_v53, %v562_v32 }
 0x108   : > { %v524_v33 = vpop.f32.mrf.mxu0 }
 0x109   : > { %v525_v35 = vadd.f32 %v1478_v53, %v524_v33  ;;  %v652_v44 = vadd.f32 %v651_v22, %v563_v38 }
 0x10b   : > { %v614_v37 = vadd.f32 %v613_v8, %v525_v35  ;;  %v692_v49 = vmax.f32 %v652_v44, 0.0  ;;  %v538_v8 = vadd.f32 %v1478_v53, %v1481_v56  ;;  %v661_v18 = vpop.f32.mrf.mxu3 }
 0x10d   : > { %v677_v40 = vmax.f32 %v614_v37, 0.0 }
 0x10e   : > { %v621_v41 = vpop.f32.mrf.mxu1  ;;  %v564_v43 = vpop.f32.mrf.mxu2 }
 0x10f   : > { %v1104_v42 = vpack.c.bf16 %v677_v40, %v676_v39  ;;  %v565_v45 = vadd.f32 %v1478_v53, %v564_v43 }
 0x110   : > { %v527_v46 = vpop.f32.mrf.mxu0 }
 0x111   : > { %1160 = vst [vmem:[%s1489_s8 + $0x28] sm:$0xff] %v1104_v42   ;;  %v654_v47 = vadd.f32 %v653_v36, %v565_v45  ;;  %v528_v51 = vadd.f32 %v1478_v53, %v527_v46 }
 0x113   : > { %v693_v50 = vmax.f32 %v654_v47, 0.0  ;;  %v617_v58 = vadd.f32 %v616_v19, %v528_v51  ;;  %v663_v32 = vpop.f32.mrf.mxu3 }
 0x115   : > { %v1144_v54 = vpack.c.bf16 %v693_v50, %v692_v49  ;;  %v678_v62 = vmax.f32 %v617_v58, 0.0 }
 0x116   : > { %v623_v52 = vpop.f32.mrf.mxu1  ;;  %v567_v55 = vpop.f32.mrf.mxu2 }
 0x117   : > { %1168 = vst [vmem:[%s1489_s8 + $0x68] sm:$0xff] %v1144_v54   ;;  %v568_v61 = vadd.f32 %v1478_v53, %v567_v55 }
 0x118   : > { %v529_v57 = vpop.f32.mrf.mxu0 }
 0x119   : > { %v530_v59 = vadd.f32 %v1478_v53, %v529_v57  ;;  %v657_v5 = vadd.f32 %v656_v48, %v568_v61 }
 0x11b   : > { %v619_v60 = vadd.f32 %v618_v30, %v530_v59  ;;  %v694_v11 = vmax.f32 %v657_v5, 0.0 }
 0x11d   : > { %v679_v63 = vmax.f32 %v619_v60, 0.0 }
 0x11e   : > { %v626_v1 = vpop.f32.mrf.mxu1  ;;  %v569_v4 = vpop.f32.mrf.mxu2 }
 0x11f   : > { %v1109_v3 = vpack.c.bf16 %v679_v63, %v678_v62  ;;  %v570_v6 = vadd.f32 %v1478_v53, %v569_v4  ;;  %v627_v12 = vadd.f32 %v626_v1, %v538_v8 }
 0x120   : > { %v532_v7 = vpop.f32.mrf.mxu0 }
 0x121   : > { %1161 = vst [vmem:[%s1489_s8 + $0x30] sm:$0xff] %v1109_v3   ;;  %v659_v9 = vadd.f32 %v658_v0, %v570_v6  ;;  %v533_v14 = vadd.f32 %v1478_v53, %v532_v7  ;;  %v682_v20 = vmax.f32 %v627_v12, 0.0 }
 0x123   : > { %v695_v13 = vmax.f32 %v659_v9, 0.0  ;;  %v622_v22 = vadd.f32 %v621_v41, %v533_v14 }
 0x125   : > { %v1149_v16 = vpack.c.bf16 %v695_v13, %v694_v11  ;;  %v680_v26 = vmax.f32 %v622_v22, 0.0 }
 0x126   : > { %v628_v15 = vpop.f32.mrf.mxu1  ;;  %v572_v19 = vpop.f32.mrf.mxu2 }
 0x127   : > { %v629_v17 = vadd.f32 %v628_v15, %v540_v10  ;;  %1169 = vst [vmem:[%s1489_s8 + $0x70] sm:$0xff] %v1149_v16   ;;  %v573_v25 = vadd.f32 %v1478_v53, %v572_v19 }
 0x128   : > { %v534_v56 = vpop.f32.mrf.mxu0 }
 0x129   : > { %v683_v21 = vmax.f32 %v629_v17, 0.0  ;;  %v535_v2 = vadd.f32 %v1478_v53, %v534_v56  ;;  %v662_v30 = vadd.f32 %v661_v18, %v573_v25 }
 0x12b   : > { %v1119_v23 = vpack.c.bf16 %v683_v21, %v682_v20  ;;  %v624_v24 = vadd.f32 %v623_v52, %v535_v2  ;;  %v696_v34 = vmax.f32 %v662_v30, 0.0 }
 0x12d   : > { %1163 = vst [vmem:[%s1489_s8 + $0x40] sm:$0xff] %v1119_v23   ;;  %v681_v27 = vmax.f32 %v624_v24, 0.0 }
 0x12e   : > { %v574_v29 = vpop.f32.mrf.mxu2 }
 0x12f   : > { %v1114_v28 = vpack.c.bf16 %v681_v27, %v680_v26  ;;  %v575_v31 = vadd.f32 %v1478_v53, %v574_v29 }
 0x131   : > { %1162 = vst [vmem:[%s1489_s8 + $0x38] sm:$0xff] %v1114_v28   ;;  %v664_v33 = vadd.f32 %v663_v32, %v575_v31 }
 0x133   : > { %v697_v35 = vmax.f32 %v664_v33, 0.0 }
 0x135   : > { %v1154_v36 = vpack.c.bf16 %v697_v35, %v696_v34 }
 0x137   : > { %1170 = vst [vmem:[%s1489_s8 + $0x78] sm:$0xff] %v1154_v36  }
 0x138   : > { %1251 = shalt.err (!%p1248_p3)
}
 0x139   : > { %s1289_s4 = smov 64   ;;  %s1290_s5 = smov 4  }
 0x13a   : > { %1181 = dma.vmem_to_hbm [thread:$0]  (%p1349_p5), %s776_s19, 2048, %s778_s20, %s763_s16, %s1289_s4, %s1289_s4, %s1290_s5  }
 0x13b PF: > { %p1187_p4 = scmp.ge.s32.totalorder %s1286_s15, 2  ;;  %s792_s6 = sand.u32 1, %s1274_s12  }
 0x13c   : > { %s793_s7 = scalar_lea.sflag [#allocation3], %s792_s6 }
 0x13d   : > { %p1184_p7 = pnand %p1187_p4, %p1353_p6 }
 0x13f   : > { %p1185_p8 = pneg %p1184_p7 }
 0x141   : > { %1269 = dma.done.wait (%p1185_p8), %s793_s7, 2048  }
 0x142   : > { %1271 = vsyncadd (%p1185_p8), %s793_s7, 4294965248  ;;  %p13_p9 = scmp.ge.s32.totalorder %s1336_s18, 4   ;;  %s1579_s12 = smov %s1278_s13 }
 0x143   : > { %s1580_s13 = smov %s1282_s14  ;;  %s1581_s14 = smov %s1347_s21 }
 0x144   : > { %s1582_s15 = smov %s1336_s18  ;;  %15 = sbr.rel (!%p13_p9) target bundleno = 3 (0x3), region = 67 }
 0x149   :  { %799 = vsyncpa [#allocation3], 1 }
 0x14a   :  { %801 = vsyncpa [#allocation3 + $0x1], 1 }

</bundles_post_ra>
